<compile_context>
chip_gen: v6e
topology: v6e:2x2x1
jax: 0.10.0
libtpu: 0.0.40
codegen_flags: <defaults>
</compile_context>

<pallas_src>
import functools

import jax
import jax.numpy as jnp
from jax import lax
from jax.experimental import pallas as pl
from jax.experimental.pallas import tpu as pltpu


def _triplet_center_kernel(x_ref, c_ref, lbl_ref, o_ref, *, margin):
    x = x_ref[...]            # (B, D), native dtype
    c = c_ref[...]            # (C, D), native dtype
    B = x.shape[0]
    C = c.shape[0]
    D = c.shape[1]

    # sim_raw[b, c] = <x_b, center_c>; NT contraction (both operands contract
    # their last dim) with f32 accumulation on the MXU. Output is lane-major
    # (B, C) so every epilogue temporary is a single vreg.
    sim_raw = lax.dot_general(
        x, c,
        dimension_numbers=(((1,), (1,)), ((), ())),
        preferred_element_type=jnp.float32)                   # (B, C)

    # Per-center squared L2 norm, produced lane-major (1, C) on the idle MXU
    # (ones-row contraction against c*c) so no (C,1)->(1,C) relayout and the
    # largest non-matmul reduction stays off the VPU/XLU.
    c32 = c.astype(jnp.float32)
    ones_row = jnp.ones((1, D), jnp.float32)
    norm_sq = lax.dot_general(
        ones_row, c32 * c32,
        dimension_numbers=(((1,), (1,)), ((), ())),
        preferred_element_type=jnp.float32)                   # (1, C)
    inv_norm = lax.rsqrt(jnp.maximum(norm_sq, 1e-24))         # (1, C), EUP
    sim = sim_raw * inv_norm                                  # (B, C), one vreg

    # One-hot mask of each sample's own class: one iota + one compare against
    # the (B, 1) int32 label column (broadcast along lanes).
    # NOTE: labels are assumed in-range [0, C), matching the PyTorch module.
    class_ids = lax.broadcasted_iota(jnp.int32, (B, C), 1)    # (B, C)
    is_pos = class_ids == lbl_ref[...]                        # (B, C) bool

    # pos_b = 1 - sim at own class; neg_b = 1 - max sim over other classes
    # (== min over other classes of 1 - sim). The `1 -` is applied after the
    # lane reductions so a dist = 1 - sim temporary is never materialized.
    pos = 1.0 - jnp.sum(jnp.where(is_pos, sim, 0.0), axis=1, keepdims=True)
    neg = 1.0 - jnp.max(jnp.where(is_pos, -jnp.inf, sim), axis=1, keepdims=True)

    per_sample = jnp.maximum(pos + margin - neg, 0.0) + pos   # (B, 1)
    o_ref[0, 0] = jnp.sum(per_sample) * (1.0 / B)


def triplet_center_abs_cosine_loss(x, centers, labels, margin=1.0):
    """x: (B, D) with ||x_i||_2 = 1; centers: (C, D); labels: (B,) int."""
    B, D = x.shape
    C, _ = centers.shape
    labels_col = labels.astype(jnp.int32).reshape(B, 1)

    # Advisory cost hint: tells XLA this custom call is tiny and memory-light
    # so it can overlap the HBM reads / the call itself with surrounding ops.
    cost = pl.CostEstimate(
        flops=2 * B * C * D + 2 * C * D,
        transcendentals=C,
        bytes_accessed=B * D * x.dtype.itemsize
        + C * D * centers.dtype.itemsize + B * 4 + 4)

    kernel = functools.partial(_triplet_center_kernel, margin=float(margin))
    out = pl.pallas_call(
        kernel,
        out_shape=jax.ShapeDtypeStruct((1, 1), jnp.float32),
        in_specs=[
            pl.BlockSpec((B, D), lambda: (0, 0)),   # x: whole array in VMEM
            pl.BlockSpec((C, D), lambda: (0, 0)),   # centers: whole array in VMEM
            pl.BlockSpec((B, 1), lambda: (0, 0)),   # labels: tiny int32 column
        ],
        out_specs=pl.BlockSpec(memory_space=pltpu.SMEM),      # scalar loss
        cost_estimate=cost,
    )(x, centers, labels_col)
    return out[0, 0]


def _reference_loss(x, centers, labels, margin=1.0):
    """Pure-JAX reference mirroring the PyTorch forward loop."""
    cn = centers / jnp.maximum(
        jnp.linalg.norm(centers, axis=1, keepdims=True), 1e-12)
    dist = 1.0 - x @ cn.T                      # (B, C)
    B, C = dist.shape
    onehot = jax.nn.one_hot(labels, C, dtype=bool)
    pos = jnp.sum(jnp.where(onehot, dist, 0.0), axis=1)
    neg = jnp.min(jnp.where(onehot, jnp.inf, dist), axis=1)
    per_sample = jax.nn.relu(pos + margin - neg) + pos
    return jnp.mean(per_sample)


if __name__ == "__main__":
    num_classes = 90
    fea_dim = 512
    batch = 4
    margin = 1.0

    key = jax.random.PRNGKey(0)
    kc, kx, kl = jax.random.split(key, 3)

    # Deterministic "parameter" init: centers ~ N(0, 1), shape (num_classes, fea_dim).
    centers = jax.random.normal(kc, (num_classes, fea_dim), dtype=jnp.float32)

    # Inputs: unit-norm feature vectors (module docstring requires ||x||2 = 1).
    x = jax.random.normal(kx, (batch, fea_dim), dtype=jnp.float32)
    x = x / jnp.linalg.norm(x, axis=1, keepdims=True)
    labels = jax.random.randint(kl, (batch,), 0, num_classes, dtype=jnp.int32)

    loss = triplet_center_abs_cosine_loss(x, centers, labels, margin=margin)
    loss = jax.block_until_ready(loss)

    ref = _reference_loss(x, centers, labels, margin=margin)
    # Kernel multiplies raw centers on the MXU and rescales afterwards, while
    # the reference normalizes centers first; the tolerance absorbs the
    # resulting reassociation / MXU-precision differences (a real semantic bug
    # would be orders of magnitude larger).
    assert jnp.allclose(loss, ref, rtol=1e-3, atol=1e-3), (loss, ref)

    print("KERNEL_OK")
</pallas_src>

<mosaic_0001>
module attributes {stable_mosaic.version = 11 : i64} {
  func.func @_triplet_center_kernel(%arg0: memref<4x512xf32, #tpu.memory_space<vmem>>, %arg1: memref<90x512xf32, #tpu.memory_space<vmem>>, %arg2: memref<4x1xi32, #tpu.memory_space<vmem>>, %arg3: memref<1x1xf32, #tpu.memory_space<smem>>) attributes {dimension_semantics = [], scalar_prefetch = 0 : i64, scratch_operands = 0 : i64, tpu.core_type = #tpu.core_type<tc>} {
    %c0 = arith.constant 0 : index
    %c0_0 = arith.constant 0 : index
    %0 = vector.load %arg0[%c0, %c0_0] : memref<4x512xf32, #tpu.memory_space<vmem>>, vector<4x512xf32>
    %c0_1 = arith.constant 0 : index
    %c0_2 = arith.constant 0 : index
    %1 = vector.load %arg1[%c0_1, %c0_2] : memref<90x512xf32, #tpu.memory_space<vmem>>, vector<90x512xf32>
    %cst = arith.constant dense<0.000000e+00> : vector<4x90xf32>
    %2 = tpu.matmul %0, %1, %cst {dimension_numbers = #tpu.dot_dimension_numbers<[1], [1], [0], [0], [0, 0, 1, 0], [], []>} : vector<4x512xf32>, vector<90x512xf32>, vector<4x90xf32> -> vector<4x90xf32>
    %cst_3 = arith.constant 1.000000e+00 : f32
    %3 = vector.broadcast %cst_3 : f32 to vector<1x512xf32>
    %4 = arith.mulf %1, %1 : vector<90x512xf32>
    %cst_4 = arith.constant dense<0.000000e+00> : vector<1x90xf32>
    %5 = tpu.matmul %3, %4, %cst_4 {dimension_numbers = #tpu.dot_dimension_numbers<[1], [1], [0], [0], [0, 0, 1, 0], [], []>} : vector<1x512xf32>, vector<90x512xf32>, vector<1x90xf32> -> vector<1x90xf32>
    %cst_5 = arith.constant 1.000000e-24 : f32
    %6 = vector.broadcast %cst_5 : f32 to vector<1x90xf32>
    %7 = arith.maximumf %5, %6 : vector<1x90xf32>
    %8 = math.rsqrt %7 : vector<1x90xf32>
    %9 = vector.broadcast %8 : vector<1x90xf32> to vector<4x90xf32>
    %10 = arith.mulf %2, %9 : vector<4x90xf32>
    %11 = tpu.iota {dimensions = array<i32: 1>} : vector<4x90xi32>
    %c0_6 = arith.constant 0 : index
    %c0_7 = arith.constant 0 : index
    %12 = vector.load %arg2[%c0_6, %c0_7] : memref<4x1xi32, #tpu.memory_space<vmem>>, vector<4x1xi32>
    %13 = vector.broadcast %12 : vector<4x1xi32> to vector<4x90xi32>
    %14 = arith.cmpi eq, %11, %13 : vector<4x90xi32>
    %cst_8 = arith.constant 0.000000e+00 : f32
    %15 = vector.broadcast %cst_8 : f32 to vector<4x90xf32>
    %16 = arith.select %14, %10, %15 : vector<4x90xi1>, vector<4x90xf32>
    %cst_9 = arith.constant dense<0.000000e+00> : vector<4xf32>
    %17 = vector.multi_reduction <add>, %16, %cst_9 [1] : vector<4x90xf32> to vector<4xf32>
    %18 = vector.shape_cast %17 : vector<4xf32> to vector<4x1xf32>
    %cst_10 = arith.constant 1.000000e+00 : f32
    %19 = vector.broadcast %cst_10 : f32 to vector<4x1xf32>
    %20 = arith.subf %19, %18 : vector<4x1xf32>
    %cst_11 = arith.constant 0xFF800000 : f32
    %21 = vector.broadcast %cst_11 : f32 to vector<4x90xf32>
    %22 = arith.select %14, %21, %10 : vector<4x90xi1>, vector<4x90xf32>
    %cst_12 = arith.constant dense<0xFF800000> : vector<4xf32>
    %23 = vector.multi_reduction <maximumf>, %22, %cst_12 [1] : vector<4x90xf32> to vector<4xf32>
    %24 = vector.shape_cast %23 : vector<4xf32> to vector<4x1xf32>
    %cst_13 = arith.constant 1.000000e+00 : f32
    %25 = vector.broadcast %cst_13 : f32 to vector<4x1xf32>
    %26 = arith.subf %25, %24 : vector<4x1xf32>
    %cst_14 = arith.constant 1.000000e+00 : f32
    %27 = vector.broadcast %cst_14 : f32 to vector<4x1xf32>
    %28 = arith.addf %20, %27 : vector<4x1xf32>
    %29 = arith.subf %28, %26 : vector<4x1xf32>
    %cst_15 = arith.constant 0.000000e+00 : f32
    %30 = vector.broadcast %cst_15 : f32 to vector<4x1xf32>
    %31 = arith.maximumf %29, %30 : vector<4x1xf32>
    %32 = arith.addf %31, %20 : vector<4x1xf32>
    %33 = vector.shape_cast %32 : vector<4x1xf32> to vector<1x4x1xf32>
    %cst_16 = arith.constant dense<0.000000e+00> : vector<1xf32>
    %34 = vector.multi_reduction <add>, %33, %cst_16 [1, 2] : vector<1x4x1xf32> to vector<1xf32>
    %35 = vector.shape_cast %34 : vector<1xf32> to vector<1x1x1xf32>
    %36 = vector.extract %35[0, 0, 0] : f32 from vector<1x1x1xf32>
    %cst_17 = arith.constant 2.500000e-01 : f32
    %37 = arith.mulf %36, %cst_17 : f32
    %c0_18 = arith.constant 0 : index
    %c0_19 = arith.constant 0 : index
    %38 = memref.load %arg3[%c0_18, %c0_19] : memref<1x1xf32, #tpu.memory_space<smem>>
    memref.store %37, %arg3[%c0_18, %c0_19] : memref<1x1xf32, #tpu.memory_space<smem>>
    return
  }
}

</mosaic_0001>

<bundles_post_ra>
// kernel: tpu_custom_call.1
= control target key start
LH: loop header
LB: loop body
LE: loop exit
PB: predicated region body
PF: predicated region fallthrough
CT: control target
= control target key end

     0   :  { %8 = vsyncpa [#allocation3], 0  ;;  %s844_s0 = inlined_call_operand.hbm [shape: f32[4,512], index: 0, kind: input, shape index: {}]   ;;  %s845_s1 = inlined_call_operand.hbm [shape: f32[90,512], index: 1, kind: input, shape index: {}]   ;;  %s846_s2 = inlined_call_operand.vmem [shape: s32[4,1], index: 2, kind: input, shape index: {}]   ;;  %s847_s3 = inlined_call_operand.hbm [shape: f32[1,1], index: 3, kind: output, shape index: {}]  }
   0x1   :  { %9 = vsyncpa [#allocation6], 0 }
   0x2   :  { %10 = vsyncpa [#allocation4], 0  ;;  %s551_s12 = smov [#allocation2]   ;;  %s552_s14 = smov [#allocation5]  }
   0x3   :  { %s17_s13 = sshll.u32 %s551_s12, 4  ;;  %s26_s15 = sshll.u32 %s552_s14, 4  ;;  %s18_s13 = int_to_ptr.vmem [resolvable:$true] %s17_s13  ;;  %s27_s15 = int_to_ptr.vmem [resolvable:$true] %s26_s15 }
   0x4   :  { %s505_s16 = scalar_lea.vmem %s18_s13, 256  ;;  %p510_p1 = scmp.lt.s32.totalorder %s18_s13, %s18_s13 }
   0x5   :  { %p506_p0 = scmp.ne.s32.totalorder %s18_s13, %s505_s16  ;;  %p511_p2 = scmp.lt.s32.totalorder %s505_s16, %s505_s16 }
   0x7   :  { %p512_p3 = por %p511_p2, %p510_p1 }
   0x9   :  { %p513_p4 = pnand %p512_p3, %p506_p0 }
   0xb   :  { %516 = shalt.err (!%p513_p4)
}
   0xc   :  { %20 = dma.hbm_to_vmem [thread:$0]  %s844_s0, 256, %s18_s13, [#allocation3]  }
   0xd   :  { %s525_s19 = scalar_lea.vmem %s27_s15, 6144  ;;  %p530_p6 = scmp.lt.s32.totalorder %s27_s15, %s27_s15 }
   0xe   :  { %p526_p5 = scmp.ne.s32.totalorder %s27_s15, %s525_s19  ;;  %p531_p7 = scmp.lt.s32.totalorder %s525_s19, %s525_s19 }
  0x10   :  { %p532_p8 = por %p531_p7, %p530_p6 }
  0x12   :  { %p533_p9 = pnand %p532_p8, %p526_p5 }
  0x14   :  { %536 = shalt.err (!%p533_p9)
}
  0x15   :  { %s553_s20 = smov 512   ;;  %s554_s21 = smov 32  }
  0x16   :  { %32 = dma.hbm_to_vmem [thread:$0]  %s845_s1, 6144, %s27_s15, [#allocation6], %s553_s20, %s553_s20, %s554_s21  }
  0x17   :  { %545 = dma.done.wait [#allocation3], 256  }
  0x18   :  { %546 = vsyncadd [#allocation3], 4294967040 }
  0x19   :  { %547 = dma.done.wait [#allocation6], 6144  }
  0x1a   :  { %548 = vsyncadd [#allocation6], 4294961152  ;;  %v555_v0 = vmov 0   ;;  %v584_v1 = vld [vmem:[#allocation5 + $0x168] sm:$0x3]  ;;  %v596_v6 = vld [vmem:[#allocation5 + $0x158] sm:$0xff] }
  0x1b   :  { %492 = vset.pattern.permute.xlu0 %v555_v0  ;;  %v586_v2 = vld [vmem:[#allocation5 + $0x178] sm:$0x3]  ;;  %v588_v3 = vld [vmem:[#allocation5 + $0x160] sm:$0x3]  ;;  %105 = vmatprep.subr.mxu0 %v584_v1  ;;  %v592_v4 = vld [vmem:[#allocation5 + $0x170] sm:$0x3]  ;;  %v282_v52 = vmul.f32 %v584_v1, %v584_v1  ;;  %v280_v59 = vmul.f32 %v596_v6, %v596_v6 }
  0x1c   :  { %175 = vmatprep.subr.mxu1 %v586_v2  ;;  %v594_v5 = vld [vmem:[#allocation5 + $0x148] sm:$0xff]  ;;  %106 = vmatpush1.xpose.msra.mxu0 %v588_v3  ;;  %v602_v7 = vld [vmem:[#allocation5 + $0x140] sm:$0xff]  ;;  %v604_v8 = vld [vmem:[#allocation5 + $0x150] sm:$0xff]  ;;  %v284_v53 = vmul.f32 %v586_v2, %v586_v2  ;;  %v281_v56 = vmul.f32 %v588_v3, %v588_v3  ;;  %v283_v57 = vmul.f32 %v592_v4, %v592_v4  ;;  %v556_v0 = vmov 1.0   ;;  %s557_s25 = smov [#allocation7]  }
  0x1d   :  { %176 = vmatpush1.xpose.msra.mxu1 %v592_v4  ;;  %107 = vmatprep.subr.mxu0 %v594_v5  ;;  %v606_v9 = vld [vmem:[#allocation5 + $0x128] sm:$0xff]  ;;  %v608_v10 = vld [vmem:[#allocation5 + $0x138] sm:$0xff]  ;;  %v614_v11 = vld [vmem:[#allocation5 + $0x120] sm:$0xff]  ;;  %v278_v58 = vmul.f32 %v594_v5, %v594_v5  ;;  %v277_v60 = vmul.f32 %v602_v7, %v602_v7  ;;  %v279_v61 = vmul.f32 %v604_v8, %v604_v8  ;;  %vm440_vm1 = vcmask 732160  }
  0x1e   :  { %177 = vmatprep.subr.mxu1 %v596_v6  ;;  %v616_v12 = vld [vmem:[#allocation5 + $0x130] sm:$0xff]  ;;  %v618_v13 = vld [vmem:[#allocation5 + $0x108] sm:$0xff]  ;;  %v620_v14 = vld [vmem:[#allocation5 + $0x118] sm:$0xff]  ;;  %v274_v62 = vmul.f32 %v606_v9, %v606_v9  ;;  %v276_v63 = vmul.f32 %v608_v10, %v608_v10  ;;  %v273_v1 = vmul.f32 %v614_v11, %v614_v11  ;;  %vm454_vm2 = vcmask 3072  }
  0x1f   :  { %v626_v15 = vld [vmem:[#allocation5 + $0x100] sm:$0xff]  ;;  %v628_v16 = vld [vmem:[#allocation5 + $0x110] sm:$0xff]  ;;  %v630_v17 = vld [vmem:[#allocation5 + $0xe8] sm:$0xff]  ;;  %v275_v2 = vmul.f32 %v616_v12, %v616_v12  ;;  %v270_v3 = vmul.f32 %v618_v13, %v618_v13  ;;  %v272_v4 = vmul.f32 %v620_v14, %v620_v14 }
  0x20   :  { %108 = vmatpush1.xpose.msra.mxu0 %v602_v7  ;;  %v632_v18 = vld [vmem:[#allocation5 + $0xf8] sm:$0xff]  ;;  %v636_v19 = vld [vmem:[#allocation5 + $0xe0] sm:$0xff]  ;;  %v640_v20 = vld [vmem:[#allocation5 + $0xf0] sm:$0xff]  ;;  %v269_v5 = vmul.f32 %v626_v15, %v626_v15  ;;  %v271_v6 = vmul.f32 %v628_v16, %v628_v16  ;;  %v266_v7 = vmul.f32 %v630_v17, %v630_v17 }
  0x21   :  { %178 = vmatpush1.xpose.msra.mxu1 %v604_v8  ;;  %109 = vmatprep.subr.mxu0 %v606_v9  ;;  %v642_v21 = vld [vmem:[#allocation5 + $0xc8] sm:$0xff]  ;;  %v644_v22 = vld [vmem:[#allocation5 + $0xd8] sm:$0xff]  ;;  %v646_v23 = vld [vmem:[#allocation2] sm:$0xff]  ;;  %v268_v8 = vmul.f32 %v632_v18, %v632_v18  ;;  %v265_v9 = vmul.f32 %v636_v19, %v636_v19 }
  0x22   :  { %179 = vmatprep.subr.mxu1 %v608_v10  ;;  %v648_v24 = vld [vmem:[#allocation2 + $0x8] sm:$0xff]  ;;  %v434_v25 = vld [vmem:[%s846_s2] sm:$0xf]  ;;  %v93_v26 = vcombine.high %v646_v23, %v646_v23  ;;  %v661_v28 = vld [vmem:[#allocation5 + $0xc0] sm:$0xff]  ;;  %v267_v10 = vmul.f32 %v640_v20, %v640_v20 }
  0x23   :  { %v94_v27 = vcombine.high %v648_v24, %v648_v24  ;;  %436 = vperm.xlu0 %492, %v434_v25   ;;  %v663_v29 = vld [vmem:[#allocation5 + $0xd0] sm:$0xff]  ;;  %v665_v30 = vld [vmem:[#allocation5 + $0xa8] sm:$0xff]  ;;  %v667_v31 = vld [vmem:[#allocation5 + $0xb8] sm:$0xff] }
  0x24   :  { %110 = vmatpush1.xpose.msra.mxu0 %v614_v11  ;;  %161 = vmatprep.mubr.f32.mxu0 %v93_v26  ;;  %v673_v32 = vld [vmem:[#allocation5 + $0xa0] sm:$0xff]  ;;  %v675_v33 = vld [vmem:[#allocation5 + $0xb0] sm:$0xff]  ;;  %v677_v34 = vld [vmem:[#allocation5 + $0x88] sm:$0xff]  ;;  %v262_v11 = vmul.f32 %v642_v21, %v642_v21 }
  0x25   :  { %180 = vmatpush1.xpose.msra.mxu1 %v616_v12  ;;  %111 = vmatprep.subr.mxu0 %v618_v13  ;;  %v679_v35 = vld [vmem:[#allocation5 + $0x98] sm:$0xff]  ;;  %v685_v36 = vld [vmem:[#allocation5 + $0x80] sm:$0xff]  ;;  %v687_v37 = vld [vmem:[#allocation5 + $0x90] sm:$0xff]  ;;  %v264_v12 = vmul.f32 %v644_v22, %v644_v22  ;;  %v261_v13 = vmul.f32 %v661_v28, %v661_v28 }
  0x26   :  { %181 = vmatprep.subr.mxu1 %v620_v14  ;;  %231 = vmatprep.mubr.f32.mxu1 %v94_v27  ;;  %v689_v38 = vld [vmem:[#allocation5 + $0x68] sm:$0xff]  ;;  %v691_v39 = vld [vmem:[#allocation5 + $0x78] sm:$0xff]  ;;  %v697_v40 = vld [vmem:[#allocation5 + $0x60] sm:$0xff]  ;;  %v263_v14 = vmul.f32 %v663_v29, %v663_v29 }
  0x27   :  { %v699_v41 = vld [vmem:[#allocation5 + $0x70] sm:$0xff]  ;;  %v701_v42 = vld [vmem:[#allocation5 + $0x48] sm:$0xff]  ;;  %v703_v43 = vld [vmem:[#allocation5 + $0x58] sm:$0xff]  ;;  %v249_v25 = vmul.f32 %v697_v40, %v697_v40 }
  0x28   :  { %112 = vmatpush1.xpose.msra.mxu0 %v626_v15  ;;  %v709_v44 = vld [vmem:[#allocation5 + $0x40] sm:$0xff]  ;;  %v711_v45 = vld [vmem:[#allocation5 + $0x50] sm:$0xff]  ;;  %v713_v46 = vld [vmem:[#allocation5 + $0x28] sm:$0xff]  ;;  %v258_v15 = vmul.f32 %v665_v30, %v665_v30  ;;  %v251_v26 = vmul.f32 %v699_v41, %v699_v41  ;;  %v246_v27 = vmul.f32 %v701_v42, %v701_v42 }
  0x29   :  { %182 = vmatpush1.xpose.msra.mxu1 %v628_v16  ;;  %113 = vmatprep.subr.mxu0 %v630_v17  ;;  %v715_v47 = vld [vmem:[#allocation5 + $0x38] sm:$0xff]  ;;  %v721_v48 = vld [vmem:[#allocation5 + $0x20] sm:$0xff]  ;;  %v723_v49 = vld [vmem:[#allocation5 + $0x30] sm:$0xff]  ;;  %v260_v16 = vmul.f32 %v667_v31, %v667_v31  ;;  %v257_v17 = vmul.f32 %v673_v32, %v673_v32 }
  0x2a   :  { %183 = vmatprep.subr.mxu1 %v632_v18  ;;  %v725_v50 = vld [vmem:[#allocation5 + $0x8] sm:$0xff]  ;;  %v727_v51 = vld [vmem:[#allocation5 + $0x18] sm:$0xff]  ;;  %v737_v54 = vld [vmem:[#allocation5] sm:$0xff]  ;;  %v259_v18 = vmul.f32 %v675_v33, %v675_v33 }
  0x2b   :  { %v739_v55 = vld [vmem:[#allocation5 + $0x10] sm:$0xff] }
  0x2c   :  { %114 = vmatpush1.xpose.msra.mxu0 %v636_v19  ;;  %v254_v19 = vmul.f32 %v677_v34, %v677_v34 }
  0x2d   :  { %184 = vmatpush1.xpose.msra.mxu1 %v640_v20  ;;  %115 = vmatprep.subr.mxu0 %v642_v21  ;;  %v256_v20 = vmul.f32 %v679_v35, %v679_v35  ;;  %v253_v21 = vmul.f32 %v685_v36, %v685_v36 }
  0x2e   :  { %185 = vmatprep.subr.mxu1 %v644_v22  ;;  %v255_v22 = vmul.f32 %v687_v37, %v687_v37 }
  0x30   :  { %116 = vmatpush1.xpose.msra.mxu0 %v661_v28  ;;  %v248_v28 = vmul.f32 %v703_v43, %v703_v43 }
  0x31   :  { %186 = vmatpush1.xpose.msra.mxu1 %v663_v29  ;;  %117 = vmatprep.subr.mxu0 %v665_v30  ;;  %v245_v29 = vmul.f32 %v709_v44, %v709_v44  ;;  %v247_v30 = vmul.f32 %v711_v45, %v711_v45 }
  0x32   :  { %187 = vmatprep.subr.mxu1 %v667_v31  ;;  %v242_v31 = vmul.f32 %v713_v46, %v713_v46 }
  0x34   :  { %118 = vmatpush1.xpose.msra.mxu0 %v673_v32  ;;  %v244_v32 = vmul.f32 %v715_v47, %v715_v47 }
  0x35   :  { %188 = vmatpush1.xpose.msra.mxu1 %v675_v33  ;;  %119 = vmatprep.subr.mxu0 %v677_v34  ;;  %v241_v33 = vmul.f32 %v721_v48, %v721_v48  ;;  %v243_v34 = vmul.f32 %v723_v49, %v723_v49 }
  0x36   :  { %189 = vmatprep.subr.mxu1 %v679_v35  ;;  %v238_v35 = vmul.f32 %v725_v50, %v725_v50 }
  0x38   :  { %120 = vmatpush1.xpose.msra.mxu0 %v685_v36  ;;  %v240_v36 = vmul.f32 %v727_v51, %v727_v51 }
  0x39   :  { %190 = vmatpush1.xpose.msra.mxu1 %v687_v37  ;;  %121 = vmatprep.subr.mxu0 %v689_v38  ;;  %v237_v37 = vmul.f32 %v737_v54, %v737_v54 }
  0x3a   :  { %191 = vmatprep.subr.mxu1 %v691_v39 }
  0x3c   :  { %122 = vmatpush1.xpose.msra.mxu0 %v697_v40 }
  0x3d   :  { %192 = vmatpush1.xpose.msra.mxu1 %v699_v41  ;;  %123 = vmatprep.subr.mxu0 %v701_v42 }
  0x3e   :  { %193 = vmatprep.subr.mxu1 %v703_v43 }
  0x40   :  { %124 = vmatpush1.xpose.msra.mxu0 %v709_v44 }
  0x41   :  { %194 = vmatpush1.xpose.msra.mxu1 %v711_v45  ;;  %125 = vmatprep.subr.mxu0 %v713_v46 }
  0x42   :  { %195 = vmatprep.subr.mxu1 %v715_v47 }
  0x44   :  { %126 = vmatpush1.xpose.msra.mxu0 %v721_v48 }
  0x45   :  { %196 = vmatpush1.xpose.msra.mxu1 %v723_v49  ;;  %127 = vmatprep.subr.mxu0 %v725_v50  ;;  %v427_v50 = vlaneseq }
  0x46   :  { %197 = vmatprep.subr.mxu1 %v727_v51 }
  0x47   :  { %v428_v51 = vshrl.u32 %v427_v50, 7 }
  0x48   :  { %128 = vmatpush1.xpose.msra.mxu0 %v737_v54 }
  0x49   :  { %198 = vmatpush1.xpose.msra.mxu1 %v739_v55  ;;  %293 = vmatprep.subr.mxu0 %v282_v52  ;;  %v429_v52 = vsub.s32 0, %v428_v51 }
  0x4a   :  { %363 = vmatprep.subr.mxu1 %v284_v53  ;;  %v433_v53 = vand.u32 127, %v427_v50 }
  0x4b   :  { %162 = vmatmul.mubr.f32.vlgmr.msra.gmra.mxu0 %v646_v23  ;;  %v250_v23 = vmul.f32 %v689_v38, %v689_v38  ;;  %v239_v38 = vmul.f32 %v739_v55, %v739_v55 }
  0x4c   :  { %232 = vmatmul.mubr.f32.vlgmr.msra.gmra.mxu1 %v648_v24  ;;  %294 = vmatpush1.xpose.msra.mxu0 %v281_v56  ;;  %v252_v24 = vmul.f32 %v691_v39, %v691_v39 }
  0x4d   :  { %364 = vmatpush1.xpose.msra.mxu1 %v283_v57  ;;  %295 = vmatprep.subr.mxu0 %v278_v58 }
  0x4e   :  { %365 = vmatprep.subr.mxu1 %v280_v59  ;;  %349 = vmatprep.mubr.f32.mxu0 %v556_v0 }
  0x4f   :  { %419 = vmatprep.mubr.f32.mxu1 %v556_v0 }
  0x50   :  { %296 = vmatpush1.xpose.msra.mxu0 %v277_v60 }
  0x51   :  { %366 = vmatpush1.xpose.msra.mxu1 %v279_v61  ;;  %297 = vmatprep.subr.mxu0 %v274_v62 }
  0x52   :  { %367 = vmatprep.subr.mxu1 %v276_v63 }
  0x54   :  { %298 = vmatpush1.xpose.msra.mxu0 %v273_v1 }
  0x55   :  { %368 = vmatpush1.xpose.msra.mxu1 %v275_v2  ;;  %299 = vmatprep.subr.mxu0 %v270_v3 }
  0x56   :  { %369 = vmatprep.subr.mxu1 %v272_v4 }
  0x58   :  { %300 = vmatpush1.xpose.msra.mxu0 %v269_v5 }
  0x59   :  { %370 = vmatpush1.xpose.msra.mxu1 %v271_v6  ;;  %301 = vmatprep.subr.mxu0 %v266_v7 }
  0x5a   :  { %371 = vmatprep.subr.mxu1 %v268_v8 }
  0x5c   :  { %302 = vmatpush1.xpose.msra.mxu0 %v265_v9 }
  0x5d   :  { %372 = vmatpush1.xpose.msra.mxu1 %v267_v10  ;;  %303 = vmatprep.subr.mxu0 %v262_v11 }
  0x5e   :  { %373 = vmatprep.subr.mxu1 %v264_v12 }
  0x60   :  { %304 = vmatpush1.xpose.msra.mxu0 %v261_v13 }
  0x61   :  { %374 = vmatpush1.xpose.msra.mxu1 %v263_v14  ;;  %305 = vmatprep.subr.mxu0 %v258_v15 }
  0x62   :  { %375 = vmatprep.subr.mxu1 %v260_v16 }
  0x64   :  { %306 = vmatpush1.xpose.msra.mxu0 %v257_v17 }
  0x65   :  { %376 = vmatpush1.xpose.msra.mxu1 %v259_v18  ;;  %307 = vmatprep.subr.mxu0 %v254_v19 }
  0x66   :  { %377 = vmatprep.subr.mxu1 %v256_v20 }
  0x68   :  { %308 = vmatpush1.xpose.msra.mxu0 %v253_v21 }
  0x69   :  { %378 = vmatpush1.xpose.msra.mxu1 %v255_v22  ;;  %309 = vmatprep.subr.mxu0 %v250_v23 }
  0x6a   :  { %379 = vmatprep.subr.mxu1 %v252_v24 }
  0x6c   :  { %310 = vmatpush1.xpose.msra.mxu0 %v249_v25 }
  0x6d   :  { %380 = vmatpush1.xpose.msra.mxu1 %v251_v26  ;;  %311 = vmatprep.subr.mxu0 %v246_v27 }
  0x6e   :  { %381 = vmatprep.subr.mxu1 %v248_v28 }
  0x70   :  { %312 = vmatpush1.xpose.msra.mxu0 %v245_v29 }
  0x71   :  { %382 = vmatpush1.xpose.msra.mxu1 %v247_v30  ;;  %313 = vmatprep.subr.mxu0 %v242_v31 }
  0x72   :  { %383 = vmatprep.subr.mxu1 %v244_v32 }
  0x74   :  { %314 = vmatpush1.xpose.msra.mxu0 %v241_v33 }
  0x75   :  { %384 = vmatpush1.xpose.msra.mxu1 %v243_v34  ;;  %315 = vmatprep.subr.mxu0 %v238_v35 }
  0x76   :  { %385 = vmatprep.subr.mxu1 %v240_v36 }
  0x78   :  { %316 = vmatpush1.xpose.msra.mxu0 %v237_v37 }
  0x79   :  { %386 = vmatpush1.xpose.msra.mxu1 %v239_v38 }
  0x7b   :  { %350 = vmatmul.mubr.f32.vlgmr.msra.gmra.mxu0 %v556_v0 }
  0x7c   :  { %420 = vmatmul.mubr.f32.vlgmr.msra.gmra.mxu1 %v556_v0 }
  0x9e   :  { %v437_v54 = vpop.permute.xlu0 %436 }
  0x9f   :  { %vm438_vm0 = vcmp.eq.s32.totalorder %v433_v53, %v437_v54 }
 0x10b   :  { %v163_v39 = vpop.f32.mrf.mxu0 }
 0x10c   :  { %v233_v40 = vpop.f32.mrf.mxu1 }
 0x10d   :  { %v234_v41 = vadd.f32 %v233_v40, %v163_v39  ;;  %v165_v42 = vpop.f32.mrf.mxu0 }
 0x10e   :  { %v235_v43 = vpop.f32.mrf.mxu1 }
 0x13b   :  { %v351_v44 = vpop.f32.mrf.mxu0 }
 0x13c   :  { %v421_v45 = vpop.f32.mrf.mxu1 }
 0x13d   :  { %v422_v46 = vadd.f32 %v421_v45, %v351_v44  ;;  %v353_v47 = vpop.f32.mrf.mxu0 }
 0x13e   :  { %v423_v48 = vpop.f32.mrf.mxu1 }
 0x13f   :  { %v425_v49 = vmax.f32 %v422_v46, 1e-24 }
 0x141   :  { %495 = vrsqrt.f32 %v425_v49 }
 0x14e   :  { %v496_v55 = vpop.eup %495 }
 0x14f   :  { %v430_v56 = vrot.slane %v496_v55, %v429_v52 }
 0x151   :  { %v431_v57 = vmul.f32 %v430_v56, %v234_v41 }
 0x153   :  { %v445_v58 = vsel %vm438_vm0, -inf, %v431_v57  ;;  %v439_v59 = vsel %vm438_vm0, %v431_v57, 0.0 }
 0x154   :  { %v446_v60 = vsel %vm440_vm1, %v445_v58, -inf  ;;  %v441_v61 = vsel %vm440_vm1, %v439_v59, 0.0 }
 0x155   :  { %447 = vmax.xlane.f32.xlu1 %v446_v60  ;;  %442 = vadd.xlane.f32.xlu0 %v441_v61 }
 0x1de   :  { %v448_v62 = vpop.xlane.xlu1 %447  ;;  %v443_v63 = vpop.xlane.xlu0 %442 }
 0x1df   :  { %v444_v0 = vsub.f32 1.0, %v443_v63  ;;  %v449_v1 = vsub.f32 1.0, %v448_v62 }
 0x1e1   :  { %v450_v2 = vadd.f32 1.0, %v444_v0 }
 0x1e3   :  { %v451_v3 = vsub.f32 %v450_v2, %v449_v1 }
 0x1e5   :  { %v452_v4 = vmax.f32 %v451_v3, 0.0 }
 0x1e7   :  { %v453_v5 = vadd.f32 %v452_v4, %v444_v0 }
 0x1e9   :  { %v455_v6 = vsel %vm454_vm2, %v453_v5, 0.0 }
 0x1ea   :  { %456 = vadd.xlane.f32.xlu1 %v455_v6 }
 0x273   :  { %v457_v7 = vpop.xlane.xlu1 %456 }
 0x274   :  { %v458_v8 = vrot.slane %v457_v7, 4 }
 0x276   :  { %v459_v9 = vadd.f32 %v458_v8, %v457_v7 }
 0x278   :  { %v460_v10 = vrot.slane %v459_v9, 2 }
 0x27a   :  { %v461_v11 = vadd.f32 %v460_v10, %v459_v9 }
 0x27c   :  { %v462_v12 = vrot.slane %v461_v11, 1 }
 0x27e   :  { %v463_v13 = vadd.f32 %v462_v12, %v461_v11 }
 0x280   :  { %483 = vpush %v463_v13 }
 0x2b1   :  { %s484_s2 = spop %483 }
 0x2b2   :  { %s465_s24 = smul.f32 0.25, %s484_s2 }
 0x2b4   :  { %467 = sst [smem:[#allocation7]] %s465_s24 }
 0x2b5   :  { %475 = dma.smem_to_hbm %s557_s25, 16, %s847_s3, [#allocation4]  }
 0x2b6   :  { %549 = dma.done.wait [#allocation4], 16  }
 0x2b7   :  { %550 = vsyncadd [#allocation4], 4294967280 }
 0x2b8   :  { %479 = sfence }
 0x2b9   :  { %480 = vsyncpa [#allocation3], 1 }
 0x2ba   :  { %481 = vsyncpa [#allocation6], 1 }
 0x2bb   :  { %482 = vsyncpa [#allocation4], 1 }

</bundles_post_ra>
